<compile_context>
chip_gen: v7x
topology: tpu7x:2x2x1
jax: 0.10.0
libtpu: 0.0.40
codegen_flags: <defaults>
</compile_context>

<pallas_src>
import functools

import jax
import jax.numpy as jnp
from jax import lax
from jax.experimental import pallas as pl
from jax.experimental.pallas import tpu as pltpu


def _cdiv(a, b):
    return -(-a // b)


def _embeddings_kernel(x_ref, pos_ref, gb_ref, o_ref, *, eps):
    # x_ref:   (KB, TS, H)  tile of inputs_embeds
    # pos_ref: (TS, H)      position + temporal embeddings (broadcast over KB)
    # gb_ref:  (2, H)       packed LayerNorm gamma (row 0) / beta (row 1)
    # o_ref:   (KB, TS, H)
    x = x_ref[...].astype(jnp.float32)
    emb = x + pos_ref[...].astype(jnp.float32)          # (KB,TS,H) + (TS,H)

    mean = jnp.mean(emb, axis=-1, keepdims=True)
    centered = emb - mean
    var = jnp.mean(centered * centered, axis=-1, keepdims=True)
    norm = centered * lax.rsqrt(var + eps)

    gamma = gb_ref[0:1, :].astype(jnp.float32)           # (1, H)
    beta = gb_ref[1:2, :].astype(jnp.float32)            # (1, H)
    # TODO(synk): nn.Dropout has no deterministic Pallas equivalent; module is
    # evaluated in eval mode (dropout == identity).
    o_ref[...] = (norm * gamma + beta).astype(o_ref.dtype)


def _vmem_budget_and_limit():
    """Generation-aware VMEM sizing: hard limit well under physical VMEM,
    tiling budget at ~half the limit (headroom for f32 intermediates)."""
    cap = 64 << 20  # conservative default: v7x-class 64 MiB per TensorCore
    try:
        cap = int(getattr(pltpu.get_tpu_info(), "vmem_capacity_bytes", cap))
    except Exception:
        pass
    if cap >= (96 << 20):            # v5e / v6e class (128 MiB physical)
        return 56 << 20, 96 << 20
    return 24 << 20, 48 << 20        # v7x class (64 MiB physical)


def _choose_tiles(B, S, H, x_bytes, pos_bytes, *, vmem_budget, min_steps=8):
    """Pick (KB, TS): KB batch elements x TS sequence rows per tile.

    Constraints ((8,128) rule on the block's last two dims):
      * TS % 8 == 0 or TS == S; H is always taken whole.
    Preferences:
      * 2x-buffered x/out + pos table fit the generation-aware VMEM budget,
      * enough grid steps (up to ~min_steps, but never forcing tiles far below
        ~512 rows) for DMA/compute overlap and megacore sharding,
      * tile height near ~512-2048 rows where there is that much work.
    """
    def vmem_cost(kb, ts):
        tile = kb * ts * H
        # 2x input + 2x output buffers (input dtype), up to 2 pos buffers,
        # plus f32 working-set headroom for the live tile. gamma/beta ~ 0.
        return 4 * tile * x_bytes + 2 * ts * H * pos_bytes + 4 * tile

    cands = [(kb, S) for kb in range(1, B + 1)]            # whole sequences
    cands += [(1, ts) for ts in range(8, S, 8)]            # sub-sequence tiles
    fitting = [c for c in cands if vmem_cost(*c) <= vmem_budget]
    if not fitting:
        fitting = [(1, min(8, S))]   # smallest legal tile

    total_rows = B * S
    step_req = min(min_steps, max(2, _cdiv(total_rows, 512)))
    desired_rows = max(8, min(2048, max(512, _cdiv(total_rows, min_steps))))

    def score(c):
        kb, ts = c
        rows = kb * ts
        n_steps = _cdiv(B, kb) * _cdiv(S, ts)
        shortfall = max(0, step_req - n_steps)
        padded_rows = _cdiv(B, kb) * kb * _cdiv(S, ts) * ts - total_rows
        return (shortfall, abs(rows - desired_rows), padded_rows, -rows)

    return min(fitting, key=score)


def perceiver_resampler_embeddings(
    pixel_values,          # [B, S, H] float
    pos_table,             # [max_position_embeddings, H]
    temporal_table,        # [max_temporal_embeddings, H]
    ln_weight,             # [H]
    ln_bias,               # [H]
    *,
    position_ids=None,     # optional shared [S] int32
    eps=1e-5,
):
    B, S, H = pixel_values.shape
    dtype = pixel_values.dtype
    x_bytes = jnp.dtype(dtype).itemsize

    # ---- glue (plain JAX): embedding-table gathers + constant folds ----
    if position_ids is None:
        position_ids = jnp.arange(S, dtype=jnp.int32)
    else:
        # Only a shared 1-D position_ids[S] is supported; per-batch [B, S] ids
        # would require a per-row gather inside the kernel.
        position_ids = jnp.asarray(position_ids).reshape(-1)[:S]
    pos_emb = jnp.take(pos_table, position_ids, axis=0)               # (S, H)
    # temporal ids default to 0 -> one row; fold it into the position table
    # (one S*H add here replaces a B*S*H add + an extra streamed input).
    # Keep the table in the input dtype; the kernel re-upcasts to f32.
    pos_plus_tmp = (pos_emb.astype(jnp.float32)
                    + temporal_table[0:1, :].astype(jnp.float32)).astype(dtype)
    pos_bytes = jnp.dtype(pos_plus_tmp.dtype).itemsize
    gb = jnp.stack([ln_weight, ln_bias], axis=0).astype(jnp.float32)   # (2, H)

    # ---- tiling: (KB batches, TS sequence rows) per grid step ----
    vmem_budget, vmem_limit = _vmem_budget_and_limit()
    KB, TS = _choose_tiles(B, S, H, x_bytes, pos_bytes, vmem_budget=vmem_budget)
    grid = (_cdiv(B, KB), _cdiv(S, TS))
    pos_invariant = (TS == S)

    kernel = functools.partial(_embeddings_kernel, eps=eps)

    cost = pl.CostEstimate(
        flops=10 * B * S * H,
        transcendentals=B * S,
        bytes_accessed=2 * B * S * H * x_bytes + S * H * pos_bytes + 2 * H * 4,
    )

    def run(single_buffer_invariants):
        def invariant_spec(shape, index_map):
            if single_buffer_invariants:
                return pl.BlockSpec(shape, index_map, pipeline_mode=pl.Buffered(1))
            return pl.BlockSpec(shape, index_map)

        if pos_invariant:
            pos_spec = invariant_spec((TS, H), lambda i, j: (j, 0))
        else:
            # pos block changes with the sequence-grid axis: keep double-buffered.
            pos_spec = pl.BlockSpec((TS, H), lambda i, j: (j, 0))

        return pl.pallas_call(
            kernel,
            out_shape=jax.ShapeDtypeStruct((B, S, H), dtype),
            grid_spec=pltpu.PrefetchScalarGridSpec(
                num_scalar_prefetch=0,
                grid=grid,
                in_specs=[
                    pl.BlockSpec((KB, TS, H), lambda i, j: (i, j, 0)),  # inputs_embeds
                    pos_spec,                                           # pos+temporal
                    invariant_spec((2, H), lambda i, j: (0, 0)),        # gamma/beta
                ],
                out_specs=pl.BlockSpec((KB, TS, H), lambda i, j: (i, j, 0)),
            ),
            compiler_params=pltpu.CompilerParams(
                dimension_semantics=("parallel", "parallel"),
                vmem_limit_bytes=vmem_limit,
            ),
            cost_estimate=cost,
        )(pixel_values, pos_plus_tmp, gb)

    try:
        return run(True)
    except Exception:
        # pipeline_mode=pl.Buffered(1) unsupported on this jax/libtpu combo;
        # fall back to default double-buffering for the invariant inputs.
        return run(False)


def _reference(pixel_values, pos_table, temporal_table, ln_w, ln_b, eps=1e-5):
    B, S, H = pixel_values.shape
    pos = pos_table[:S]
    tmp = temporal_table[0]
    emb = pixel_values.astype(jnp.float32) + pos[None] + tmp[None, None]
    mean = emb.mean(-1, keepdims=True)
    var = ((emb - mean) ** 2).mean(-1, keepdims=True)
    return ((emb - mean) / jnp.sqrt(var + eps)) * ln_w + ln_b


if __name__ == "__main__":
    # Small config consistent with the module:
    B, S, H = 2, 8, 32
    max_position_embeddings = 64
    max_temporal_embeddings = 16
    eps = 1e-5

    key = jax.random.PRNGKey(0)
    k0, k1, k2, k3, k4 = jax.random.split(key, 5)

    pixel_values = jax.random.normal(k0, (B, S, H), dtype=jnp.float32)
    pos_table = jax.random.normal(k1, (max_position_embeddings, H), dtype=jnp.float32)
    temporal_table = jax.random.normal(k2, (max_temporal_embeddings, H), dtype=jnp.float32)
    # Deterministic (non-trivial) LayerNorm affine params.
    ln_weight = 1.0 + 0.1 * jax.random.normal(k3, (H,), dtype=jnp.float32)
    ln_bias = 0.1 * jax.random.normal(k4, (H,), dtype=jnp.float32)

    out = perceiver_resampler_embeddings(
        pixel_values, pos_table, temporal_table, ln_weight, ln_bias, eps=eps
    )
    out = jax.block_until_ready(out)

    ref = _reference(pixel_values, pos_table, temporal_table, ln_weight, ln_bias, eps)
    assert out.shape == (B, S, H)
    assert jnp.allclose(out, ref, atol=1e-5, rtol=1e-5), "mismatch vs reference"

    print("KERNEL_OK")
</pallas_src>

<mosaic_0001>
module attributes {stable_mosaic.version = 11 : i64} {
  func.func @_embeddings_kernel(%arg0: i32, %arg1: i32, %arg2: memref<1x8x32xf32, #tpu.memory_space<vmem>>, %arg3: memref<8x32xf32, #tpu.memory_space<vmem>>, %arg4: memref<2x32xf32, #tpu.memory_space<vmem>>, %arg5: memref<1x8x32xf32, #tpu.memory_space<vmem>>) attributes {dimension_semantics = [#tpu.dimension_semantics<parallel>, #tpu.dimension_semantics<parallel>], iteration_bounds = array<i64: 2, 1>, scalar_prefetch = 0 : i64, scratch_operands = 0 : i64, tpu.core_type = #tpu.core_type<tc>, window_params = [{transform_indices = @transform_0, window_bounds = array<i64: 1, 8, 32>}, {pipeline_mode = #tpu.pipeline_mode<synchronous>, transform_indices = @transform_1, window_bounds = array<i64: 8, 32>}, {pipeline_mode = #tpu.pipeline_mode<synchronous>, transform_indices = @transform_2, window_bounds = array<i64: 2, 32>}, {transform_indices = @transform_3, window_bounds = array<i64: 1, 8, 32>}]} {
    %c0 = arith.constant 0 : index
    %c0_0 = arith.constant 0 : index
    %c0_1 = arith.constant 0 : index
    %0 = vector.load %arg2[%c0, %c0_0, %c0_1] : memref<1x8x32xf32, #tpu.memory_space<vmem>>, vector<1x8x32xf32>
    %c0_2 = arith.constant 0 : index
    %c0_3 = arith.constant 0 : index
    %1 = vector.load %arg3[%c0_2, %c0_3] : memref<8x32xf32, #tpu.memory_space<vmem>>, vector<8x32xf32>
    %2 = vector.shape_cast %1 : vector<8x32xf32> to vector<1x8x32xf32>
    %3 = arith.addf %0, %2 : vector<1x8x32xf32>
    %cst = arith.constant dense<0.000000e+00> : vector<1x8xf32>
    %4 = vector.multi_reduction <add>, %3, %cst [2] : vector<1x8x32xf32> to vector<1x8xf32>
    %5 = vector.shape_cast %4 : vector<1x8xf32> to vector<1x8x1xf32>
    %cst_4 = arith.constant 3.200000e+01 : f32
    %6 = vector.broadcast %cst_4 : f32 to vector<1x8x1xf32>
    %7 = arith.divf %5, %6 : vector<1x8x1xf32>
    %8 = vector.broadcast %7 : vector<1x8x1xf32> to vector<1x8x32xf32>
    %9 = arith.subf %3, %8 : vector<1x8x32xf32>
    %10 = arith.mulf %9, %9 : vector<1x8x32xf32>
    %cst_5 = arith.constant dense<0.000000e+00> : vector<1x8xf32>
    %11 = vector.multi_reduction <add>, %10, %cst_5 [2] : vector<1x8x32xf32> to vector<1x8xf32>
    %12 = vector.shape_cast %11 : vector<1x8xf32> to vector<1x8x1xf32>
    %cst_6 = arith.constant 3.200000e+01 : f32
    %13 = vector.broadcast %cst_6 : f32 to vector<1x8x1xf32>
    %14 = arith.divf %12, %13 : vector<1x8x1xf32>
    %cst_7 = arith.constant 9.99999974E-6 : f32
    %15 = vector.broadcast %cst_7 : f32 to vector<1x8x1xf32>
    %16 = arith.addf %14, %15 : vector<1x8x1xf32>
    %17 = math.rsqrt %16 : vector<1x8x1xf32>
    %18 = vector.broadcast %17 : vector<1x8x1xf32> to vector<1x8x32xf32>
    %19 = arith.mulf %9, %18 : vector<1x8x32xf32>
    %c0_8 = arith.constant 0 : index
    %c0_9 = arith.constant 0 : index
    %20 = vector.load %arg4[%c0_8, %c0_9] : memref<2x32xf32, #tpu.memory_space<vmem>>, vector<1x32xf32>
    %c1 = arith.constant 1 : index
    %c0_10 = arith.constant 0 : index
    %21 = vector.load %arg4[%c1, %c0_10] : memref<2x32xf32, #tpu.memory_space<vmem>>, vector<1x32xf32>
    %22 = vector.shape_cast %20 : vector<1x32xf32> to vector<1x1x32xf32>
    %23 = vector.broadcast %22 : vector<1x1x32xf32> to vector<1x8x32xf32>
    %24 = arith.mulf %19, %23 : vector<1x8x32xf32>
    %25 = vector.shape_cast %21 : vector<1x32xf32> to vector<1x1x32xf32>
    %26 = vector.broadcast %25 : vector<1x1x32xf32> to vector<1x8x32xf32>
    %27 = arith.addf %24, %26 : vector<1x8x32xf32>
    %c0_11 = arith.constant 0 : index
    %c0_12 = arith.constant 0 : index
    %c0_13 = arith.constant 0 : index
    %28 = vector.load %arg5[%c0_11, %c0_12, %c0_13] : memref<1x8x32xf32, #tpu.memory_space<vmem>>, vector<1x8x32xf32>
    tpu.vector_store %arg5[%c0_11, %c0_12, %c0_13], %27 {strides = array<i32>} : memref<1x8x32xf32, #tpu.memory_space<vmem>>, vector<1x8x32xf32>,
    return
  }
  func.func @transform_0(%arg0: i32, %arg1: i32) -> (i32, i32, i32) {
    %c0_i32 = arith.constant 0 : i32
    %c0_i32_0 = arith.constant 0 : i32
    return %arg0, %arg1, %c0_i32 : i32, i32, i32
  }
  func.func @transform_1(%arg0: i32, %arg1: i32) -> (i32, i32) {
    %c0_i32 = arith.constant 0 : i32
    %c0_i32_0 = arith.constant 0 : i32
    return %arg1, %c0_i32 : i32, i32
  }
  func.func @transform_2(%arg0: i32, %arg1: i32) -> (i32, i32) {
    %c0_i32 = arith.constant 0 : i32
    %c0_i32_0 = arith.constant 0 : i32
    %c0_i32_1 = arith.constant 0 : i32
    return %c0_i32, %c0_i32_0 : i32, i32
  }
  func.func @transform_3(%arg0: i32, %arg1: i32) -> (i32, i32, i32) {
    %c0_i32 = arith.constant 0 : i32
    %c0_i32_0 = arith.constant 0 : i32
    return %arg0, %arg1, %c0_i32 : i32, i32, i32
  }
}

module attributes {stable_mosaic.version = 11 : i64} {
  func.func @_embeddings_kernel(%arg0: i32, %arg1: i32, %arg2: memref<1x8x32xf32, #tpu.memory_space<vmem>>, %arg3: memref<8x32xf32, #tpu.memory_space<vmem>>, %arg4: memref<2x32xf32, #tpu.memory_space<vmem>>, %arg5: memref<1x8x32xf32, #tpu.memory_space<vmem>>) attributes {dimension_semantics = [#tpu.dimension_semantics<parallel>, #tpu.dimension_semantics<parallel>], iteration_bounds = array<i64: 2, 1>, scalar_prefetch = 0 : i64, scratch_operands = 0 : i64, tpu.core_type = #tpu.core_type<tc>, window_params = [{transform_indices = @transform_0, window_bounds = array<i64: 1, 8, 32>}, {transform_indices = @transform_1, window_bounds = array<i64: 8, 32>}, {pipeline_mode = #tpu.pipeline_mode<synchronous>, transform_indices = @transform_2, window_bounds = array<i64: 2, 32>}, {transform_indices = @transform_3, window_bounds = array<i64: 1, 8, 32>}]} {
    %c0 = arith.constant 0 : index
    %c0_0 = arith.constant 0 : index
    %c0_1 = arith.constant 0 : index
    %0 = vector.load %arg2[%c0, %c0_0, %c0_1] : memref<1x8x32xf32, #tpu.memory_space<vmem>>, vector<1x8x32xf32>
    %c0_2 = arith.constant 0 : index
    %c0_3 = arith.constant 0 : index
    %1 = vector.load %arg3[%c0_2, %c0_3] : memref<8x32xf32, #tpu.memory_space<vmem>>, vector<8x32xf32>
    %2 = vector.shape_cast %1 : vector<8x32xf32> to vector<1x8x32xf32>
    %3 = arith.addf %0, %2 : vector<1x8x32xf32>
    %cst = arith.constant dense<0.000000e+00> : vector<1x8xf32>
    %4 = vector.multi_reduction <add>, %3, %cst [2] : vector<1x8x32xf32> to vector<1x8xf32>
    %5 = vector.shape_cast %4 : vector<1x8xf32> to vector<1x8x1xf32>
    %cst_4 = arith.constant 3.200000e+01 : f32
    %6 = vector.broadcast %cst_4 : f32 to vector<1x8x1xf32>
    %7 = arith.divf %5, %6 : vector<1x8x1xf32>
    %8 = vector.broadcast %7 : vector<1x8x1xf32> to vector<1x8x32xf32>
    %9 = arith.subf %3, %8 : vector<1x8x32xf32>
    %10 = arith.mulf %9, %9 : vector<1x8x32xf32>
    %cst_5 = arith.constant dense<0.000000e+00> : vector<1x8xf32>
    %11 = vector.multi_reduction <add>, %10, %cst_5 [2] : vector<1x8x32xf32> to vector<1x8xf32>
    %12 = vector.shape_cast %11 : vector<1x8xf32> to vector<1x8x1xf32>
    %cst_6 = arith.constant 3.200000e+01 : f32
    %13 = vector.broadcast %cst_6 : f32 to vector<1x8x1xf32>
    %14 = arith.divf %12, %13 : vector<1x8x1xf32>
    %cst_7 = arith.constant 9.99999974E-6 : f32
    %15 = vector.broadcast %cst_7 : f32 to vector<1x8x1xf32>
    %16 = arith.addf %14, %15 : vector<1x8x1xf32>
    %17 = math.rsqrt %16 : vector<1x8x1xf32>
    %18 = vector.broadcast %17 : vector<1x8x1xf32> to vector<1x8x32xf32>
    %19 = arith.mulf %9, %18 : vector<1x8x32xf32>
    %c0_8 = arith.constant 0 : index
    %c0_9 = arith.constant 0 : index
    %20 = vector.load %arg4[%c0_8, %c0_9] : memref<2x32xf32, #tpu.memory_space<vmem>>, vector<1x32xf32>
    %c1 = arith.constant 1 : index
    %c0_10 = arith.constant 0 : index
    %21 = vector.load %arg4[%c1, %c0_10] : memref<2x32xf32, #tpu.memory_space<vmem>>, vector<1x32xf32>
    %22 = vector.shape_cast %20 : vector<1x32xf32> to vector<1x1x32xf32>
    %23 = vector.broadcast %22 : vector<1x1x32xf32> to vector<1x8x32xf32>
    %24 = arith.mulf %19, %23 : vector<1x8x32xf32>
    %25 = vector.shape_cast %21 : vector<1x32xf32> to vector<1x1x32xf32>
    %26 = vector.broadcast %25 : vector<1x1x32xf32> to vector<1x8x32xf32>
    %27 = arith.addf %24, %26 : vector<1x8x32xf32>
    %c0_11 = arith.constant 0 : index
    %c0_12 = arith.constant 0 : index
    %c0_13 = arith.constant 0 : index
    %28 = vector.load %arg5[%c0_11, %c0_12, %c0_13] : memref<1x8x32xf32, #tpu.memory_space<vmem>>, vector<1x8x32xf32>
    tpu.vector_store %arg5[%c0_11, %c0_12, %c0_13], %27 {strides = array<i32>} : memref<1x8x32xf32, #tpu.memory_space<vmem>>, vector<1x8x32xf32>,
    return
  }
  func.func @transform_0(%arg0: i32, %arg1: i32) -> (i32, i32, i32) {
    %c0_i32 = arith.constant 0 : i32
    %c0_i32_0 = arith.constant 0 : i32
    return %arg0, %arg1, %c0_i32 : i32, i32, i32
  }
  func.func @transform_1(%arg0: i32, %arg1: i32) -> (i32, i32) {
    %c0_i32 = arith.constant 0 : i32
    %c0_i32_0 = arith.constant 0 : i32
    return %arg1, %c0_i32 : i32, i32
  }
  func.func @transform_2(%arg0: i32, %arg1: i32) -> (i32, i32) {
    %c0_i32 = arith.constant 0 : i32
    %c0_i32_0 = arith.constant 0 : i32
    %c0_i32_1 = arith.constant 0 : i32
    return %c0_i32, %c0_i32_0 : i32, i32
  }
  func.func @transform_3(%arg0: i32, %arg1: i32) -> (i32, i32, i32) {
    %c0_i32 = arith.constant 0 : i32
    %c0_i32_0 = arith.constant 0 : i32
    return %arg0, %arg1, %c0_i32 : i32, i32, i32
  }
}

</mosaic_0001>

<bundles_post_ra>
// kernel: tpu_custom_call.1
= control target key start
LH: loop header
LB: loop body
LE: loop exit
PB: predicated region body
PF: predicated region fallthrough
CT: control target
= control target key end

     0   :  { %8 = vsyncpa [#allocation3], 0  ;;  %s847_s0 = inlined_call_operand.hbm [shape: f32[2,8,32], index: 0, kind: input, shape index: {}]   ;;  %s848_s1 = inlined_call_operand.hbm [shape: f32[8,32], index: 1, kind: input, shape index: {}]   ;;  %s849_s2 = inlined_call_operand.vmem [shape: f32[2,32], index: 2, kind: input, shape index: {}]   ;;  %s850_s3 = inlined_call_operand.hbm [shape: f32[2,8,32], index: 3, kind: output, shape index: {}]  }
   0x1   :  { %10 = vsyncpa [#allocation3 + $0x1], 0 }
   0x2   :  { %11 = vsyncpa [#allocation6], 0 }
   0x3   :  { %12 = vsyncpa [#allocation4], 0 }
   0x4   :  { %14 = vsyncpa [#allocation4 + $0x1], 0  ;;  %s622_s12 = smov 0   ;;  %s624_s13 = smov 0  }
   0x5   :  { %s626_s14 = smov 0   ;;  %s628_s15 = smov 0  }
   0x6   :  { %s630_s16 = smov 0   ;;  %s632_s17 = smov 0  }
   0x7 LB: > { %s361_s18 = sadd.s32 4294967295, %s597_s17   ;;  %s362_s19 = sadd.s32 4294967294, %s597_s17   ;;  %s597_s17 = sphi %s632_s17, %s20_s17   ;;  %s593_s16 = sphi %s630_s16, %s875_s16   ;;  %s589_s15 = sphi %s628_s15, %s874_s15   ;;  %s585_s14 = sphi %s626_s14, %s873_s14   ;;  %s581_s13 = sphi %s624_s13, %s872_s13   ;;  %s577_s12 = sphi %s622_s12, %s871_s12  }
   0x8   : > { %p54_p0 = scmp.ne.s32.totalorder %s581_s13, %s577_s12  ;;  %p656_p1 = scmp.eq.s32.totalorder %s361_s18, 0 }
   0x9   : > { %p660_p2 = scmp.eq.s32.totalorder %s361_s18, 1  ;;  %p133_p3 = scmp.eq.s32.totalorder %s362_s19, 1 }
   0xa   : > { %s855_s20 = scalar_select %p656_p1, 1, 0 }
   0xb   : > { %s856_s21 = scalar_select %p660_p2, 1, 0 }
   0xc   : > { %p666_p4 = por %p656_p1, %p54_p0  ;;  %p363_p5 = scmp.ge.s32.totalorder %s597_s17, 1 }
   0xd   : > { %p671_p6 = por %p133_p3, %p54_p0  ;;  %p140_p7 = scmp.lt.s32.totalorder %s597_s17, 3 }
   0xe   : > { %s857_s22 = scalar_select %p666_p4, 1, 0 }
   0xf   : > { %s858_s23 = scalar_select %p671_p6, 1, 0 }
  0x10   : > { %p676_p8 = pnand %p363_p5, %p140_p7  ;;  %s599_s25 = smov [#allocation5]  }
  0x11   : > { %s155_s26 = sshll.u32 %s599_s25, 4  ;;  %s32_s28 = sadd.s32 1, %s593_s16  ;;  %s156_s26 = int_to_ptr.vmem [resolvable:$true] %s155_s26 }
  0x12   : > { %s859_s24 = scalar_select %p676_p8, 1, 0 }
  0x13   : > { %p386_p10 = pneg %p676_p8  ;;  %s41_s29 = sadd.s32 1, %s585_s14 }
  0x14   : > { %p691_p12 = scmp.ge.s32.totalorder %s32_s28, 2  ;;  %s453_s6 = scalar_lea.hbm %s848_s1, 128 }
  0x15   : > { %p685_p11 = pnand %p386_p10, %p656_p1  ;;  %p454_p13 = scmp.ne.s32.totalorder %s848_s1, %s453_s6 }
  0x16   : > { %s861_s30 = scalar_select %p691_p12, 1, 0 }
  0x17   : > { %p455_p0 = pneg %p685_p11  ;;  %p460_p7 = scmp.lt.u32.totalorder %s453_s6, %s848_s1 }
  0x19   : > { %p456_p3 = pnand %p455_p0, %p454_p13 }
  0x1b   : > { %p457_p5 = pneg %p456_p3 }
  0x1d   : > { %p462_p10 = pnand %p460_p7, %p457_p5 }
  0x1f   : > { %465 = shalt.err (!%p462_p10)
}
  0x20   : > { %s466_s11 = scalar_lea.vmem %s156_s26, 128  ;;  %p474_p4 = scmp.lt.s32.totalorder %s156_s26, %s156_s26 }
  0x21   : > { %p467_p9 = scmp.ne.s32.totalorder %s156_s26, %s466_s11  ;;  %p475_p8 = scmp.lt.s32.totalorder %s466_s11, %s466_s11 }
  0x23   : > { %p469_p6 = pnand %p467_p9, %p455_p0  ;;  %p476_p2 = por %p475_p8, %p474_p4 }
  0x25   : > { %p470_p1 = pneg %p469_p6 }
  0x27   : > { %p477_p12 = pnand %p476_p2, %p470_p1 }
  0x29   : > { %480 = shalt.err (!%p477_p12)
}
  0x2a   : > { %389 = dma.hbm_to_vmem [thread:$0]  (!%p685_p11), %s848_s1, 128, %s156_s26, [#allocation6]  }
  0x2b   : > { %p862_p4 = scmp.ne.s32.totalorder %s861_s30, 0  ;;  %p48_p1 = scmp.ne.s32.totalorder %s585_s14, %s581_s13 }
  0x2c   : > { %p49_p2 = scmp.eq.s32.totalorder %s597_s17, 0  ;;  %p399_p6 = scmp.lt.s32.totalorder %s597_s17, 2 }
  0x2d   : > { %s877_s28 = smov (%p862_p4, %s32_s28), 0  ;;  %p863_p12 = scmp.ne.s32.totalorder %s856_s21, 0 }
  0x2e   : > { %s36_s25 = ssub.s32 %s593_s16, %s877_s28  ;;  %p50_p9 = por %p49_p2, %p48_p1 }
  0x2f   : > { %p39_p8 = scmp.eq.s32.totalorder %s36_s25, 0  ;;  %p723_p13 = por %p863_p12, %p48_p1 }
  0x30   : > { %s169_s4 = sand.u32 1, %s585_s14   ;;  %s367_s30 = sshll.u32 %s593_s16, 7 }
  0x31   : > { %s731_s5 = scalar_select %p39_p8, %s585_s14, %s41_s29  }
  0x32   : > { %s366_s26 = sshll.u32 %s169_s4, 3  ;;  %s737_s8 = scalar_lea.hbm %s847_s0, %s367_s30 }
  0x33   : > { %s173_s21 = scalar_lea.vmem [#allocation2], %s366_s26  ;;  %p741_p11 = pnand %p399_p6, %p50_p9 }
  0x34   : > { %s181_s9 = sshll.u32 %s173_s21, 4  ;;  %s170_s29 = scalar_lea.sflag [#allocation3], %s169_s4  ;;  %s739_s9 = int_to_ptr.vmem [resolvable:$true] %s181_s9 }
  0x35   : > { %s481_s11 = scalar_lea.hbm %s737_s8, 128  ;;  %p483_p3 = pneg %p741_p11 }
  0x36   : > { %p482_p0 = scmp.ne.s32.totalorder %s737_s8, %s481_s11  ;;  %s486_s25 = scalar_lea.hbm %s847_s0, 256 }
  0x37   : > { %p487_p10 = scmp.lt.u32.totalorder %s737_s8, %s847_s0  ;;  %p488_p4 = scmp.lt.u32.totalorder %s486_s25, %s481_s11 }
  0x38   : > { %p484_p5 = pnand %p483_p3, %p482_p0  ;;  %p490_p2 = scmp.lt.u32.totalorder %s481_s11, %s737_s8 }
  0x39   : > { %p489_p1 = por %p488_p4, %p487_p10 }
  0x3a   : > { %p485_p7 = pneg %p484_p5 }
  0x3b   : > { %p491_p6 = por %p490_p2, %p489_p1 }
  0x3d   : > { %p492_p8 = pnand %p491_p6, %p485_p7 }
  0x3f   : > { %495 = shalt.err (!%p492_p8)
}
  0x40   : > { %s496_s4 = scalar_lea.vmem %s739_s9, 128  ;;  %s600_s6 = smov [#allocation2]  }
  0x41   : > { %p497_p9 = scmp.ne.s32.totalorder %s739_s9, %s496_s4  ;;  %s501_s7 = sshll.u32 %s600_s6, 4  ;;  %s502_s7 = int_to_ptr.vmem [resolvable:$false] %s501_s7 }
  0x42   : > { %s503_s21 = scalar_lea.vmem %s502_s7, 256  ;;  %p504_p5 = scmp.lt.s32.totalorder %s739_s9, %s502_s7 }
  0x43   : > { %p499_p12 = pnand %p497_p9, %p483_p3  ;;  %p505_p10 = scmp.lt.s32.totalorder %s503_s21, %s496_s4 }
  0x45   : > { %p500_p0 = pneg %p499_p12  ;;  %p506_p4 = por %p505_p10, %p504_p5 }
  0x47   : > { %p507_p1 = pnand %p506_p4, %p500_p0 }
  0x49   : > { %510 = shalt.err (!%p507_p1)
}
  0x4a   : > { %393 = dma.hbm_to_vmem [thread:$0]  (!%p741_p11), %s737_s8, 128, %s739_s9, %s170_s29  }
  0x4b   : > { %p866_p7 = scmp.ne.s32.totalorder %s859_s24, 0 }
  0x4c   : > { %s773_s11 = sand.u32 (!%p866_p7), 1, %s581_s13   ;;  %p867_p3 = scmp.ne.s32.totalorder (!%p866_p7), %s857_s22, 0 }
  0x4d   : > { %190 = sbr.rel (%p866_p7) target bundleno = 418 (0x1a2), region = 32  ;;  %s369_s18 = sshll.u32 (!%p866_p7), %s773_s11, 3 }
  0x4e   : > { %s193_s19 = scalar_lea.sflag (!%p866_p7), [#allocation3], %s773_s11  ;;  %s196_s25 = scalar_lea.vmem (!%p866_p7), [#allocation2], %s369_s18 }
  0x54   : > { %564 = dma.done.wait (%p867_p3), %s193_s19, 128  }
  0x55   : > { %566 = vsyncadd (%p867_p3), %s193_s19, 4294967168  ;;  %p868_p2 = scmp.ne.s32.totalorder %s855_s20, 0 }
  0x57   : > { %568 = dma.done.wait (%p868_p2), [#allocation6], 128  }
  0x58   : > { %570 = vsyncadd (%p868_p2), [#allocation6], 4294967168  ;;  %v223_v0 = vld [vmem:[%s196_s25] sm:$0xff]  ;;  %v224_v1 = vld [vmem:[#allocation5] sm:$0xff]  ;;  %vm226_vm0 = vcmask 261120   ;;  %s375_s9 = sshll.u32 %s589_s15, 7 }
  0x59   : > { %v225_v2 = vadd.f32 %v224_v1, %v223_v0  ;;  %v372_v13 = vld [vmem:[%s849_s2] ss:$0 sm:$0xff]  ;;  %v373_v15 = vld [vmem:[%s849_s2 + $0x1] ss:$0 sm:$0xff]  ;;  %s222_s10 = scalar_lea.vmem [#allocation7], %s369_s18  ;;  %s797_s4 = scalar_lea.hbm %s850_s3, %s375_s9 }
  0x5a   : > { %s269_s29 = sshll.u32 %s222_s10, 4  ;;  %s255_s6 = scalar_lea.sflag [#allocation4], %s773_s11  ;;  %s799_s29 = int_to_ptr.vmem [resolvable:$true] %s269_s29 }
  0x5b   : > { %v227_v3 = vsel %vm226_vm0, %v225_v2, 0.0  ;;  %s511_s7 = scalar_lea.vmem %s799_s29, 128  ;;  %s601_s15 = smov [#allocation7]  }
  0x5c   : > { %228 = vadd.xlane.f32.xlu0 %v227_v3  ;;  %p512_p11 = scmp.ne.s32.totalorder %s799_s29, %s511_s7  ;;  %s515_s21 = sshll.u32 %s601_s15, 4  ;;  %s516_s21 = int_to_ptr.vmem [resolvable:$false] %s515_s21 }
  0x5d   : > { %s517_s18 = scalar_lea.vmem %s516_s21, 256  ;;  %p518_p9 = scmp.lt.s32.totalorder %s799_s29, %s516_s21 }
  0x5e   : > { %p513_p6 = pnand %p512_p11, %p723_p13  ;;  %p519_p12 = scmp.lt.s32.totalorder %s517_s18, %s511_s7 }
  0x60   : > { %p514_p8 = pneg %p513_p6  ;;  %p520_p0 = por %p519_p12, %p518_p9 }
  0x62   : > { %p521_p5 = pnand %p520_p0, %p514_p8 }
  0xe9   : > { %v229_v4 = vpop.xlane.xlu0 %228 }
  0xea   : > { %v231_v5 = vmul.f32 0.03125, %v229_v4 }
  0xec   : > { %v232_v6 = vsub.f32 %v225_v2, %v231_v5 }
  0xee   : > { %v233_v7 = vmul.f32 %v232_v6, %v232_v6 }
  0xf0   : > { %v234_v8 = vsel %vm226_vm0, %v233_v7, 0.0 }
  0xf1   : > { %235 = vadd.xlane.f32.xlu0 %v234_v8 }
 0x17e   : > { %v236_v9 = vpop.xlane.xlu0 %235 }
 0x17f   : > { %v237_v10 = vmul.f32 0.03125, %v236_v9 }
 0x181   : > { %v238_v11 = vadd.f32 1e-05, %v237_v10 }
 0x183   : > { %451 = vrsqrt.f32 %v238_v11 }
 0x18d   : > { %v452_v12 = vpop.eup %451 }
 0x18e   : > { %v240_v14 = vmul.f32 %v452_v12, %v232_v6 }
 0x190   : > { %v247_v16 = vmul.f32 %v372_v13, %v240_v14 }
 0x192   : > { %v252_v17 = vadd.f32 %v373_v15, %v247_v16 }
 0x194   : > { %253 = vst.msk [vmem:[%s222_s10] sm:$0xff] %vm226_vm0, %v252_v17 }
 0x195   : > { %524 = shalt.err (!%p521_p5)
}
 0x196   : > { %s525_s11 = scalar_lea.hbm %s797_s4, 128  ;;  %s529_s20 = scalar_lea.hbm %s850_s3, 256 }
 0x197   : > { %p526_p10 = scmp.ne.s32.totalorder %s797_s4, %s525_s11  ;;  %p530_p7 = scmp.lt.u32.totalorder %s797_s4, %s850_s3 }
 0x198   : > { %p531_p3 = scmp.lt.u32.totalorder %s529_s20, %s525_s11  ;;  %p533_p11 = scmp.lt.u32.totalorder %s525_s11, %s797_s4 }
 0x199   : > { %p527_p4 = pnand %p526_p10, %p723_p13 }
 0x19a   : > { %p532_p2 = por %p531_p3, %p530_p7 }
 0x19b   : > { %p528_p1 = pneg %p527_p4 }
 0x19c   : > { %p534_p6 = por %p533_p11, %p532_p2 }
 0x19e   : > { %p535_p8 = pnand %p534_p6, %p528_p1 }
 0x1a0   : > { %538 = shalt.err (!%p535_p8)
}
 0x1a1   : > { %384 = dma.vmem_to_hbm [thread:$0]  (%p723_p13), %s799_s29, 128, %s797_s4, %s255_s6  }
 0x1a2 PF: > { %s281_s8 = sand.u32 1, %s577_s12   ;;  %p869_p9 = scmp.ne.s32.totalorder %s858_s23, 0 }
 0x1a3   : > { %p870_p12 = scmp.ge.s32.totalorder %s597_s17, 2  ;;  %s282_s9 = scalar_lea.sflag [#allocation4], %s281_s8 }
 0x1a5   : > { %p395_p0 = pnand %p870_p12, %p869_p9 }
 0x1a7   : > { %572 = dma.done.wait (!%p395_p0), %s282_s9, 128  }
 0x1a8   : > { %574 = vsyncadd (!%p395_p0), %s282_s9, 4294967168  ;;  %s20_s17 = sadd.s32 1, %s597_s17   ;;  %s871_s12 = smov %s581_s13 }
 0x1a9   : > { %p17_p5 = scmp.ge.s32.totalorder %s20_s17, 4   ;;  %s872_s13 = smov %s585_s14 }
 0x1aa   : > { %s873_s14 = smov %s731_s5  ;;  %s874_s15 = smov %s593_s16 }
 0x1ab   : > { %s875_s16 = smov %s877_s28  ;;  %19 = sbr.rel (!%p17_p5) target bundleno = 7 (0x7), region = 82 }
 0x1b2   :  { %287 = vsyncpa [#allocation3], 1 }
 0x1b3   :  { %289 = vsyncpa [#allocation3 + $0x1], 1 }
 0x1b4   :  { %290 = vsyncpa [#allocation6], 1 }
 0x1b5   :  { %291 = vsyncpa [#allocation4], 1 }
 0x1b6   :  { %293 = vsyncpa [#allocation4 + $0x1], 1 }

// kernel: tpu_custom_call.1
= control target key start
LH: loop header
LB: loop body
LE: loop exit
PB: predicated region body
PF: predicated region fallthrough
CT: control target
= control target key end

     0   :  { %8 = vsyncpa [#allocation3], 0  ;;  %s847_s0 = inlined_call_operand.hbm [shape: f32[2,8,32], index: 0, kind: input, shape index: {}]   ;;  %s848_s1 = inlined_call_operand.hbm [shape: f32[8,32], index: 1, kind: input, shape index: {}]   ;;  %s849_s2 = inlined_call_operand.vmem [shape: f32[2,32], index: 2, kind: input, shape index: {}]   ;;  %s850_s3 = inlined_call_operand.hbm [shape: f32[2,8,32], index: 3, kind: output, shape index: {}]  }
   0x1   :  { %10 = vsyncpa [#allocation3 + $0x1], 0 }
   0x2   :  { %11 = vsyncpa [#allocation6], 0 }
   0x3   :  { %12 = vsyncpa [#allocation4], 0 }
   0x4   :  { %14 = vsyncpa [#allocation4 + $0x1], 0  ;;  %s622_s12 = smov 0   ;;  %s624_s13 = smov 0  }
   0x5   :  { %s626_s14 = smov 0   ;;  %s628_s15 = smov 0  }
   0x6   :  { %s630_s16 = smov 0   ;;  %s632_s17 = smov 0  }
   0x7 LB: > { %s361_s18 = sadd.s32 4294967295, %s597_s17   ;;  %s362_s19 = sadd.s32 4294967294, %s597_s17   ;;  %s597_s17 = sphi %s632_s17, %s20_s17   ;;  %s593_s16 = sphi %s630_s16, %s875_s16   ;;  %s589_s15 = sphi %s628_s15, %s874_s15   ;;  %s585_s14 = sphi %s626_s14, %s873_s14   ;;  %s581_s13 = sphi %s624_s13, %s872_s13   ;;  %s577_s12 = sphi %s622_s12, %s871_s12  }
   0x8   : > { %p54_p0 = scmp.ne.s32.totalorder %s581_s13, %s577_s12  ;;  %p656_p1 = scmp.eq.s32.totalorder %s361_s18, 0 }
   0x9   : > { %p660_p2 = scmp.eq.s32.totalorder %s361_s18, 1  ;;  %p133_p3 = scmp.eq.s32.totalorder %s362_s19, 1 }
   0xa   : > { %s855_s20 = scalar_select %p656_p1, 1, 0 }
   0xb   : > { %s856_s21 = scalar_select %p660_p2, 1, 0 }
   0xc   : > { %p666_p4 = por %p656_p1, %p54_p0  ;;  %p363_p5 = scmp.ge.s32.totalorder %s597_s17, 1 }
   0xd   : > { %p671_p6 = por %p133_p3, %p54_p0  ;;  %p140_p7 = scmp.lt.s32.totalorder %s597_s17, 3 }
   0xe   : > { %s857_s22 = scalar_select %p666_p4, 1, 0 }
   0xf   : > { %s858_s23 = scalar_select %p671_p6, 1, 0 }
  0x10   : > { %p676_p8 = pnand %p363_p5, %p140_p7  ;;  %s599_s25 = smov [#allocation5]  }
  0x11   : > { %s155_s26 = sshll.u32 %s599_s25, 4  ;;  %s32_s28 = sadd.s32 1, %s593_s16  ;;  %s156_s26 = int_to_ptr.vmem [resolvable:$true] %s155_s26 }
  0x12   : > { %s859_s24 = scalar_select %p676_p8, 1, 0 }
  0x13   : > { %p386_p10 = pneg %p676_p8  ;;  %s41_s29 = sadd.s32 1, %s585_s14 }
  0x14   : > { %p691_p12 = scmp.ge.s32.totalorder %s32_s28, 2  ;;  %s453_s6 = scalar_lea.hbm %s848_s1, 128 }
  0x15   : > { %p685_p11 = pnand %p386_p10, %p656_p1  ;;  %p454_p13 = scmp.ne.s32.totalorder %s848_s1, %s453_s6 }
  0x16   : > { %s861_s30 = scalar_select %p691_p12, 1, 0 }
  0x17   : > { %p455_p0 = pneg %p685_p11  ;;  %p460_p7 = scmp.lt.u32.totalorder %s453_s6, %s848_s1 }
  0x19   : > { %p456_p3 = pnand %p455_p0, %p454_p13 }
  0x1b   : > { %p457_p5 = pneg %p456_p3 }
  0x1d   : > { %p462_p10 = pnand %p460_p7, %p457_p5 }
  0x1f   : > { %465 = shalt.err (!%p462_p10)
}
  0x20   : > { %s466_s11 = scalar_lea.vmem %s156_s26, 128  ;;  %p474_p4 = scmp.lt.s32.totalorder %s156_s26, %s156_s26 }
  0x21   : > { %p467_p9 = scmp.ne.s32.totalorder %s156_s26, %s466_s11  ;;  %p475_p8 = scmp.lt.s32.totalorder %s466_s11, %s466_s11 }
  0x23   : > { %p469_p6 = pnand %p467_p9, %p455_p0  ;;  %p476_p2 = por %p475_p8, %p474_p4 }
  0x25   : > { %p470_p1 = pneg %p469_p6 }
  0x27   : > { %p477_p12 = pnand %p476_p2, %p470_p1 }
  0x29   : > { %480 = shalt.err (!%p477_p12)
}
  0x2a   : > { %389 = dma.hbm_to_vmem [thread:$0]  (!%p685_p11), %s848_s1, 128, %s156_s26, [#allocation6]  }
  0x2b   : > { %p862_p4 = scmp.ne.s32.totalorder %s861_s30, 0  ;;  %p48_p1 = scmp.ne.s32.totalorder %s585_s14, %s581_s13 }
  0x2c   : > { %p49_p2 = scmp.eq.s32.totalorder %s597_s17, 0  ;;  %p399_p6 = scmp.lt.s32.totalorder %s597_s17, 2 }
  0x2d   : > { %s877_s28 = smov (%p862_p4, %s32_s28), 0  ;;  %p863_p12 = scmp.ne.s32.totalorder %s856_s21, 0 }
  0x2e   : > { %s36_s25 = ssub.s32 %s593_s16, %s877_s28  ;;  %p50_p9 = por %p49_p2, %p48_p1 }
  0x2f   : > { %p39_p8 = scmp.eq.s32.totalorder %s36_s25, 0  ;;  %p723_p13 = por %p863_p12, %p48_p1 }
  0x30   : > { %s169_s4 = sand.u32 1, %s585_s14   ;;  %s367_s30 = sshll.u32 %s593_s16, 7 }
  0x31   : > { %s731_s5 = scalar_select %p39_p8, %s585_s14, %s41_s29  }
  0x32   : > { %s366_s26 = sshll.u32 %s169_s4, 3  ;;  %s737_s8 = scalar_lea.hbm %s847_s0, %s367_s30 }
  0x33   : > { %s173_s21 = scalar_lea.vmem [#allocation2], %s366_s26  ;;  %p741_p11 = pnand %p399_p6, %p50_p9 }
  0x34   : > { %s181_s9 = sshll.u32 %s173_s21, 4  ;;  %s170_s29 = scalar_lea.sflag [#allocation3], %s169_s4  ;;  %s739_s9 = int_to_ptr.vmem [resolvable:$true] %s181_s9 }
  0x35   : > { %s481_s11 = scalar_lea.hbm %s737_s8, 128  ;;  %p483_p3 = pneg %p741_p11 }
  0x36   : > { %p482_p0 = scmp.ne.s32.totalorder %s737_s8, %s481_s11  ;;  %s486_s25 = scalar_lea.hbm %s847_s0, 256 }
  0x37   : > { %p487_p10 = scmp.lt.u32.totalorder %s737_s8, %s847_s0  ;;  %p488_p4 = scmp.lt.u32.totalorder %s486_s25, %s481_s11 }
  0x38   : > { %p484_p5 = pnand %p483_p3, %p482_p0  ;;  %p490_p2 = scmp.lt.u32.totalorder %s481_s11, %s737_s8 }
  0x39   : > { %p489_p1 = por %p488_p4, %p487_p10 }
  0x3a   : > { %p485_p7 = pneg %p484_p5 }
  0x3b   : > { %p491_p6 = por %p490_p2, %p489_p1 }
  0x3d   : > { %p492_p8 = pnand %p491_p6, %p485_p7 }
  0x3f   : > { %495 = shalt.err (!%p492_p8)
}
  0x40   : > { %s496_s4 = scalar_lea.vmem %s739_s9, 128  ;;  %s600_s6 = smov [#allocation2]  }
  0x41   : > { %p497_p9 = scmp.ne.s32.totalorder %s739_s9, %s496_s4  ;;  %s501_s7 = sshll.u32 %s600_s6, 4  ;;  %s502_s7 = int_to_ptr.vmem [resolvable:$false] %s501_s7 }
  0x42   : > { %s503_s21 = scalar_lea.vmem %s502_s7, 256  ;;  %p504_p5 = scmp.lt.s32.totalorder %s739_s9, %s502_s7 }
  0x43   : > { %p499_p12 = pnand %p497_p9, %p483_p3  ;;  %p505_p10 = scmp.lt.s32.totalorder %s503_s21, %s496_s4 }
  0x45   : > { %p500_p0 = pneg %p499_p12  ;;  %p506_p4 = por %p505_p10, %p504_p5 }
  0x47   : > { %p507_p1 = pnand %p506_p4, %p500_p0 }
  0x49   : > { %510 = shalt.err (!%p507_p1)
}
  0x4a   : > { %393 = dma.hbm_to_vmem [thread:$0]  (!%p741_p11), %s737_s8, 128, %s739_s9, %s170_s29  }
  0x4b   : > { %p866_p7 = scmp.ne.s32.totalorder %s859_s24, 0 }
  0x4c   : > { %s773_s11 = sand.u32 (!%p866_p7), 1, %s581_s13   ;;  %p867_p3 = scmp.ne.s32.totalorder (!%p866_p7), %s857_s22, 0 }
  0x4d   : > { %190 = sbr.rel (%p866_p7) target bundleno = 418 (0x1a2), region = 32  ;;  %s369_s18 = sshll.u32 (!%p866_p7), %s773_s11, 3 }
  0x4e   : > { %s193_s19 = scalar_lea.sflag (!%p866_p7), [#allocation3], %s773_s11  ;;  %s196_s25 = scalar_lea.vmem (!%p866_p7), [#allocation2], %s369_s18 }
  0x54   : > { %564 = dma.done.wait (%p867_p3), %s193_s19, 128  }
  0x55   : > { %566 = vsyncadd (%p867_p3), %s193_s19, 4294967168  ;;  %p868_p2 = scmp.ne.s32.totalorder %s855_s20, 0 }
  0x57   : > { %568 = dma.done.wait (%p868_p2), [#allocation6], 128  }
  0x58   : > { %570 = vsyncadd (%p868_p2), [#allocation6], 4294967168  ;;  %v223_v0 = vld [vmem:[%s196_s25] sm:$0xff]  ;;  %v224_v1 = vld [vmem:[#allocation5] sm:$0xff]  ;;  %vm226_vm0 = vcmask 261120   ;;  %s375_s9 = sshll.u32 %s589_s15, 7 }
  0x59   : > { %v225_v2 = vadd.f32 %v224_v1, %v223_v0  ;;  %v372_v13 = vld [vmem:[%s849_s2] ss:$0 sm:$0xff]  ;;  %v373_v15 = vld [vmem:[%s849_s2 + $0x1] ss:$0 sm:$0xff]  ;;  %s222_s10 = scalar_lea.vmem [#allocation7], %s369_s18  ;;  %s797_s4 = scalar_lea.hbm %s850_s3, %s375_s9 }
  0x5a   : > { %s269_s29 = sshll.u32 %s222_s10, 4  ;;  %s255_s6 = scalar_lea.sflag [#allocation4], %s773_s11  ;;  %s799_s29 = int_to_ptr.vmem [resolvable:$true] %s269_s29 }
  0x5b   : > { %v227_v3 = vsel %vm226_vm0, %v225_v2, 0.0  ;;  %s511_s7 = scalar_lea.vmem %s799_s29, 128  ;;  %s601_s15 = smov [#allocation7]  }
  0x5c   : > { %228 = vadd.xlane.f32.xlu0 %v227_v3  ;;  %p512_p11 = scmp.ne.s32.totalorder %s799_s29, %s511_s7  ;;  %s515_s21 = sshll.u32 %s601_s15, 4  ;;  %s516_s21 = int_to_ptr.vmem [resolvable:$false] %s515_s21 }
  0x5d   : > { %s517_s18 = scalar_lea.vmem %s516_s21, 256  ;;  %p518_p9 = scmp.lt.s32.totalorder %s799_s29, %s516_s21 }
  0x5e   : > { %p513_p6 = pnand %p512_p11, %p723_p13  ;;  %p519_p12 = scmp.lt.s32.totalorder %s517_s18, %s511_s7 }
  0x60   : > { %p514_p8 = pneg %p513_p6  ;;  %p520_p0 = por %p519_p12, %p518_p9 }
  0x62   : > { %p521_p5 = pnand %p520_p0, %p514_p8 }
  0xe9   : > { %v229_v4 = vpop.xlane.xlu0 %228 }
  0xea   : > { %v231_v5 = vmul.f32 0.03125, %v229_v4 }
  0xec   : > { %v232_v6 = vsub.f32 %v225_v2, %v231_v5 }
  0xee   : > { %v233_v7 = vmul.f32 %v232_v6, %v232_v6 }
  0xf0   : > { %v234_v8 = vsel %vm226_vm0, %v233_v7, 0.0 }
  0xf1   : > { %235 = vadd.xlane.f32.xlu0 %v234_v8 }
 0x17e   : > { %v236_v9 = vpop.xlane.xlu0 %235 }
 0x17f   : > { %v237_v10 = vmul.f32 0.03125, %v236_v9 }
 0x181   : > { %v238_v11 = vadd.f32 1e-05, %v237_v10 }
 0x183   : > { %451 = vrsqrt.f32 %v238_v11 }
 0x18d   : > { %v452_v12 = vpop.eup %451 }
 0x18e   : > { %v240_v14 = vmul.f32 %v452_v12, %v232_v6 }
 0x190   : > { %v247_v16 = vmul.f32 %v372_v13, %v240_v14 }
 0x192   : > { %v252_v17 = vadd.f32 %v373_v15, %v247_v16 }
 0x194   : > { %253 = vst.msk [vmem:[%s222_s10] sm:$0xff] %vm226_vm0, %v252_v17 }
 0x195   : > { %524 = shalt.err (!%p521_p5)
}
 0x196   : > { %s525_s11 = scalar_lea.hbm %s797_s4, 128  ;;  %s529_s20 = scalar_lea.hbm %s850_s3, 256 }
 0x197   : > { %p526_p10 = scmp.ne.s32.totalorder %s797_s4, %s525_s11  ;;  %p530_p7 = scmp.lt.u32.totalorder %s797_s4, %s850_s3 }
 0x198   : > { %p531_p3 = scmp.lt.u32.totalorder %s529_s20, %s525_s11  ;;  %p533_p11 = scmp.lt.u32.totalorder %s525_s11, %s797_s4 }
 0x199   : > { %p527_p4 = pnand %p526_p10, %p723_p13 }
 0x19a   : > { %p532_p2 = por %p531_p3, %p530_p7 }
 0x19b   : > { %p528_p1 = pneg %p527_p4 }
 0x19c   : > { %p534_p6 = por %p533_p11, %p532_p2 }
 0x19e   : > { %p535_p8 = pnand %p534_p6, %p528_p1 }
 0x1a0   : > { %538 = shalt.err (!%p535_p8)
}
 0x1a1   : > { %384 = dma.vmem_to_hbm [thread:$0]  (%p723_p13), %s799_s29, 128, %s797_s4, %s255_s6  }
 0x1a2 PF: > { %s281_s8 = sand.u32 1, %s577_s12   ;;  %p869_p9 = scmp.ne.s32.totalorder %s858_s23, 0 }
 0x1a3   : > { %p870_p12 = scmp.ge.s32.totalorder %s597_s17, 2  ;;  %s282_s9 = scalar_lea.sflag [#allocation4], %s281_s8 }
 0x1a5   : > { %p395_p0 = pnand %p870_p12, %p869_p9 }
 0x1a7   : > { %572 = dma.done.wait (!%p395_p0), %s282_s9, 128  }
 0x1a8   : > { %574 = vsyncadd (!%p395_p0), %s282_s9, 4294967168  ;;  %s20_s17 = sadd.s32 1, %s597_s17   ;;  %s871_s12 = smov %s581_s13 }
 0x1a9   : > { %p17_p5 = scmp.ge.s32.totalorder %s20_s17, 4   ;;  %s872_s13 = smov %s585_s14 }
 0x1aa   : > { %s873_s14 = smov %s731_s5  ;;  %s874_s15 = smov %s593_s16 }
 0x1ab   : > { %s875_s16 = smov %s877_s28  ;;  %19 = sbr.rel (!%p17_p5) target bundleno = 7 (0x7), region = 82 }
 0x1b2   :  { %287 = vsyncpa [#allocation3], 1 }
 0x1b3   :  { %289 = vsyncpa [#allocation3 + $0x1], 1 }
 0x1b4   :  { %290 = vsyncpa [#allocation6], 1 }
 0x1b5   :  { %291 = vsyncpa [#allocation4], 1 }
 0x1b6   :  { %293 = vsyncpa [#allocation4 + $0x1], 1 }

</bundles_post_ra>
